<compile_context>
chip_gen: v7x
topology: tpu7x:2x2x1
jax: 0.10.0
libtpu: 0.0.40
codegen_flags: <defaults>
</compile_context>

<pallas_src>
import functools

import jax
import jax.numpy as jnp
from jax.experimental import pallas as pl
from jax.experimental.pallas import tpu as pltpu


def _patch_embed_kernel(x_ref, w_ref, b_ref, o_ref):
    # x_ref: (TM, Kp)    bf16 tile of flattened (zero-padded) patches
    # w_ref: (Kp, Npad)  bf16 projection weight (grid-invariant block)
    # b_ref: (1, Npad)   f32 bias (grid-invariant block)
    # o_ref: (TM, Npad)  output tile
    acc = jnp.dot(x_ref[...], w_ref[...], preferred_element_type=jnp.float32)
    o_ref[...] = (acc + b_ref[...]).astype(o_ref.dtype)


def _round_up(x, m):
    return ((x + m - 1) // m) * m


def _choose_tm(m: int) -> int:
    """Largest MXU-friendly row tile that still leaves >= 4 grid steps
    (>= 2 pipelined steps per TensorCore on v7x)."""
    for tm in (512, 256, 128, 64, 32, 16, 8):
        if m >= 4 * tm:
            return tm
    return 8


@functools.cache
def _buffered_supported() -> bool:
    """One-time eager probe: does this jax/Mosaic build accept pl.Buffered
    pipeline modes in this context?  (Avoids a try/except around a traced
    lowering, which would not be caught under jax.jit.)"""
    if not hasattr(pl, "Buffered"):
        return False
    try:
        def k(a_ref, w_ref, o_ref):
            o_ref[...] = a_ref[...] + w_ref[...]

        x = jnp.zeros((32, 128), jnp.float32)
        w = jnp.zeros((8, 128), jnp.float32)
        out = pl.pallas_call(
            k,
            out_shape=jax.ShapeDtypeStruct((32, 128), jnp.float32),
            grid_spec=pltpu.PrefetchScalarGridSpec(
                num_scalar_prefetch=0,
                grid=(4,),
                in_specs=[
                    pl.BlockSpec((8, 128), lambda i: (i, 0),
                                 pipeline_mode=pl.Buffered(3)),
                    pl.BlockSpec((8, 128), lambda i: (0, 0),
                                 pipeline_mode=pl.Buffered(1)),
                ],
                out_specs=pl.BlockSpec((8, 128), lambda i: (i, 0)),
            ),
        )(x, w)
        jax.block_until_ready(out)
        return True
    except Exception:
        return False


@functools.cache
def _tpu_vmem_bytes():
    try:
        return int(pltpu.get_tpu_info().vmem_capacity_bytes)
    except Exception:
        return None


def _patch_matmul(xp, w, b, *, tm, out_dtype, buffered_ok):
    """xp: (M, Kp) bf16, w: (Kp, Npad) bf16, b: (1, Npad) f32 -> (M, Npad)."""
    M, Kp = xp.shape
    N = w.shape[1]
    assert M % tm == 0 and Kp % 128 == 0 and N % 128 == 0, (M, tm, Kp, N)
    steps = M // tm

    in_bytes = jnp.dtype(xp.dtype).itemsize
    w_bytes = jnp.dtype(w.dtype).itemsize
    out_bytes = jnp.dtype(out_dtype).itemsize

    cost = pl.CostEstimate(
        flops=2 * M * Kp * N,
        transcendentals=0,
        bytes_accessed=(M * Kp * in_bytes + Kp * N * w_bytes + N * 4
                        + M * N * out_bytes),
    )

    # Buffer depths: grid-invariant weight/bias get a single buffer (fetched
    # once, halves their VMEM footprint); the streaming x tile gets a 3rd
    # buffer only on high-VMEM chips (v5e/v6e, 128 MiB) with enough steps.
    n_x_bufs, n_w_bufs, n_b_bufs = 2, 2, 2
    x_kwargs, w_kwargs, b_kwargs = {}, {}, {}
    if buffered_ok:
        w_kwargs = dict(pipeline_mode=pl.Buffered(1)); n_w_bufs = 1
        b_kwargs = dict(pipeline_mode=pl.Buffered(1)); n_b_bufs = 1
        vmem_cap = _tpu_vmem_bytes()
        if steps >= 4 and vmem_cap is not None and vmem_cap >= (100 << 20):
            x_kwargs = dict(pipeline_mode=pl.Buffered(3)); n_x_bufs = 3

    vmem_est = int(1.5 * (n_x_bufs * tm * Kp * in_bytes
                          + 2 * tm * N * out_bytes
                          + n_w_bufs * Kp * N * w_bytes
                          + n_b_bufs * N * 4)) + (2 << 20)
    # Cap below v7x's 64 MiB physical VMEM to keep compiler scratch headroom.
    vmem_limit = max(32 << 20, min(48 << 20, vmem_est))

    return pl.pallas_call(
        _patch_embed_kernel,
        out_shape=jax.ShapeDtypeStruct((M, N), out_dtype),
        grid_spec=pltpu.PrefetchScalarGridSpec(
            num_scalar_prefetch=0,
            grid=(steps,),
            in_specs=[
                pl.BlockSpec((tm, Kp), lambda i: (i, 0), **x_kwargs),
                pl.BlockSpec((Kp, N), lambda i: (0, 0), **w_kwargs),
                pl.BlockSpec((1, N), lambda i: (0, 0), **b_kwargs),
            ],
            out_specs=pl.BlockSpec((tm, N), lambda i: (i, 0)),
        ),
        compiler_params=pltpu.CompilerParams(
            dimension_semantics=("parallel",),
            vmem_limit_bytes=vmem_limit,
        ),
        cost_estimate=cost,
    )(xp, w, b)


class PatchEmbed:
    """Image to Patch Embedding (matches PyTorch nn.Conv2d with stride == kernel)."""

    def __init__(self, img_size=16, patch_size=4, in_chans=4, embed_dim=32,
                 no_patch_embed_bias=False, key=None, compute_dtype=jnp.bfloat16,
                 output_dtype=None, output_format="NCHW", xla_fallback_elems=0):
        to2 = lambda v: (v, v) if isinstance(v, int) else tuple(v)
        img_size = to2(img_size)
        patch_size = to2(patch_size)
        self.img_size = img_size
        self.patch_size = patch_size
        self.patch_shape = (img_size[0] // patch_size[0], img_size[1] // patch_size[1])
        self.num_patches = self.patch_shape[0] * self.patch_shape[1]
        self.in_chans = in_chans
        self.embed_dim = embed_dim
        self.compute_dtype = compute_dtype
        self.output_dtype = output_dtype          # e.g. jnp.bfloat16 to halve out writes
        self.output_format = output_format        # "NCHW" (Conv2d) or "NLC" (tokens)
        self.xla_fallback_elems = xla_fallback_elems  # M*K*E below this -> plain jnp.dot

        if key is None:
            key = jax.random.PRNGKey(42)
        kw, kb = jax.random.split(key)
        fan_in = in_chans * patch_size[0] * patch_size[1]
        bound = 1.0 / (fan_in ** 0.5)
        # Conv2d weight layout: (out_channels, in_channels, kh, kw), kept in f32
        # as the reference parameterization.
        self.weight = jax.random.uniform(
            kw, (embed_dim, in_chans, patch_size[0], patch_size[1]),
            minval=-bound, maxval=bound, dtype=jnp.float32)
        if no_patch_embed_bias:
            self.bias = jnp.zeros((embed_dim,), jnp.float32)
        else:
            self.bias = jax.random.uniform(
                kb, (embed_dim,), minval=-bound, maxval=bound, dtype=jnp.float32)

        # One-time kernel-side parameter prep: no per-forward weight transpose,
        # bf16 MXU operand.  K rows and N columns padded to multiples of 128 so
        # both the x-tile loads and the output stores are lane-dense (zeros are
        # exact no-ops for the matmul).  N stays 128-granular (no blind 256 pad).
        K = fan_in
        E = embed_dim
        self._k_pad = _round_up(max(K, 128), 128)
        self._n_pad = _round_up(max(E, 128), 128)
        w2 = self.weight.reshape(E, K).T              # (K, E), (C, ph, pw) flatten order
        w2 = jnp.pad(w2, ((0, self._k_pad - K), (0, self._n_pad - E)))
        b2 = jnp.pad(self.bias, (0, self._n_pad - E))
        self._w2 = w2.astype(compute_dtype)
        self._b2 = b2.reshape(1, self._n_pad).astype(jnp.float32)

        # Eager one-time feature probe (safe under later jax.jit of __call__).
        self._buffered_ok = _buffered_supported()

    def __call__(self, x, output_format=None):
        # x: NCHW (B, C, H, W); default return NCHW (B, embed_dim, Hp, Wp) like Conv2d.
        B, C, H, W = x.shape
        assert H == self.img_size[0] and W == self.img_size[1], (
            f"Input image size ({H}*{W}) doesn't match model "
            f"({self.img_size[0]}*{self.img_size[1]}).")
        assert jnp.issubdtype(x.dtype, jnp.floating), x.dtype
        fmt = output_format or self.output_format
        ph, pw = self.patch_size
        Hp, Wp = self.patch_shape
        E = self.embed_dim
        K = C * ph * pw
        out_dtype = self.output_dtype or x.dtype

        # TODO(synk): fold this NCHW -> (M, Kp) patch relayout into the Pallas
        # pipeline (BlockSpec pulling (C, ph, W) slabs per grid step) to remove
        # the extra HBM round trip of the activations.
        xp = x.astype(self.compute_dtype)               # bf16 halves relayout bytes
        xp = xp.reshape(B, C, Hp, ph, Wp, pw)
        xp = xp.transpose(0, 2, 4, 1, 3, 5)             # (B, Hp, Wp, C, ph, pw)
        xp = xp.reshape(B * Hp * Wp, K)                 # (M, K)
        M = B * Hp * Wp

        if M * K * E < self.xla_fallback_elems:
            # Tiny problems are launch/relayout dominated: a fused XLA dot wins.
            tok = (jnp.dot(xp, self._w2[:K, :E], preferred_element_type=jnp.float32)
                   + self._b2[:, :E]).astype(out_dtype)
        else:
            if self._k_pad != K:
                xp = jnp.pad(xp, ((0, 0), (0, self._k_pad - K)))   # lane-dense K
            tm = _choose_tm(M)
            m_pad = _round_up(M, 2 * tm)                 # even #steps (v7x core balance)
            if m_pad != M:
                xp = jnp.pad(xp, ((0, m_pad - M), (0, 0)))
            out = _patch_matmul(xp, self._w2, self._b2, tm=tm,
                                out_dtype=out_dtype, buffered_ok=self._buffered_ok)
            tok = out[:M, :E]                            # strip row/col padding

        if fmt == "NLC":
            # Token layout (what a ViT consumes next); skips the NCHW transpose.
            return tok.reshape(B, Hp * Wp, E)
        return tok.reshape(B, Hp, Wp, E).transpose(0, 3, 1, 2)     # NCHW


def _reference_conv(x, weight, bias):
    """Pure-JAX f32 reference: strided conv == the PyTorch forward."""
    out = jax.lax.conv_general_dilated(
        x, weight,
        window_strides=weight.shape[2:],
        padding="VALID",
        dimension_numbers=("NCHW", "OIHW", "NCHW"))
    return out + bias.reshape(1, -1, 1, 1)


def _reference_bf16_matmul(x, model):
    """Pure-JAX mirror of the kernel's bf16 compute path (tight check)."""
    B, C, H, W = x.shape
    ph, pw = model.patch_size
    Hp, Wp = model.patch_shape
    E = model.embed_dim
    K = C * ph * pw
    xp = x.astype(model.compute_dtype).reshape(B, C, Hp, ph, Wp, pw)
    xp = xp.transpose(0, 2, 4, 1, 3, 5).reshape(B * Hp * Wp, K)
    out = (jnp.dot(xp, model._w2[:K, :E], preferred_element_type=jnp.float32)
           + model._b2[:, :E]).astype(x.dtype)
    return out.reshape(B, Hp, Wp, E).transpose(0, 3, 1, 2)


if __name__ == "__main__":
    key = jax.random.PRNGKey(0)
    kx, kparams = jax.random.split(key)

    B, C, H, W = 2, 4, 16, 16
    patch = 4
    embed_dim = 32

    x = jax.random.normal(kx, (B, C, H, W), dtype=jnp.float32)

    model = PatchEmbed(img_size=H, patch_size=patch, in_chans=C,
                       embed_dim=embed_dim, key=kparams)

    out = jax.block_until_ready(model(x))
    assert out.shape == (B, embed_dim, H // patch, W // patch), out.shape

    # Tight check against a pure-JAX mirror of the same bf16 compute path.
    ref_bf16 = _reference_bf16_matmul(x, model)
    assert jnp.allclose(out, ref_bf16, atol=1e-4, rtol=1e-4), (
        float(jnp.max(jnp.abs(out - ref_bf16))))

    # Semantic check against the f32 Conv2d reference (bf16-operand tolerance).
    ref = _reference_conv(x, model.weight, model.bias)
    assert jnp.allclose(out, ref, atol=2e-2, rtol=2e-2), (
        float(jnp.max(jnp.abs(out - ref))))

    # Token-layout output (skips the post-kernel NCHW transpose) must agree.
    tok = jax.block_until_ready(model(x, output_format="NLC"))
    assert tok.shape == (B, model.num_patches, embed_dim), tok.shape
    assert jnp.allclose(tok, out.reshape(B, embed_dim, -1).transpose(0, 2, 1),
                        atol=1e-6, rtol=1e-6)

    print("KERNEL_OK")
</pallas_src>

<mosaic_0001>
module attributes {stable_mosaic.version = 11 : i64} {
  func.func @_patch_embed_kernel(%arg0: i32, %arg1: memref<8x128xbf16, #tpu.memory_space<vmem>>, %arg2: memref<128x128xbf16, #tpu.memory_space<vmem>>, %arg3: memref<1x128xf32, #tpu.memory_space<vmem>>, %arg4: memref<8x128xf32, #tpu.memory_space<vmem>>) attributes {dimension_semantics = [#tpu.dimension_semantics<parallel>], iteration_bounds = array<i64: 4>, scalar_prefetch = 0 : i64, scratch_operands = 0 : i64, tpu.core_type = #tpu.core_type<tc>, window_params = [{transform_indices = @transform_0, window_bounds = array<i64: 8, 128>}, {pipeline_mode = #tpu.pipeline_mode<synchronous>, transform_indices = @transform_1, window_bounds = array<i64: 128, 128>}, {pipeline_mode = #tpu.pipeline_mode<synchronous>, transform_indices = @transform_2, window_bounds = array<i64: 1, 128>}, {transform_indices = @transform_3, window_bounds = array<i64: 8, 128>}]} {
    %c0 = arith.constant 0 : index
    %c0_0 = arith.constant 0 : index
    %0 = vector.load %arg1[%c0, %c0_0] : memref<8x128xbf16, #tpu.memory_space<vmem>>, vector<8x128xbf16>
    %c0_1 = arith.constant 0 : index
    %c0_2 = arith.constant 0 : index
    %1 = vector.load %arg2[%c0_1, %c0_2] : memref<128x128xbf16, #tpu.memory_space<vmem>>, vector<128x128xbf16>
    %cst = arith.constant dense<0.000000e+00> : vector<8x128xf32>
    %2 = tpu.matmul %0, %1, %cst {dimension_numbers = #tpu.dot_dimension_numbers<[1], [0], [0], [1], [0, 0, 1, 1], [], []>} : vector<8x128xbf16>, vector<128x128xbf16>, vector<8x128xf32> -> vector<8x128xf32>
    %c0_3 = arith.constant 0 : index
    %c0_4 = arith.constant 0 : index
    %3 = vector.load %arg3[%c0_3, %c0_4] : memref<1x128xf32, #tpu.memory_space<vmem>>, vector<1x128xf32>
    %4 = vector.broadcast %3 : vector<1x128xf32> to vector<8x128xf32>
    %5 = arith.addf %2, %4 : vector<8x128xf32>
    %c0_5 = arith.constant 0 : index
    %c0_6 = arith.constant 0 : index
    %6 = vector.load %arg4[%c0_5, %c0_6] : memref<8x128xf32, #tpu.memory_space<vmem>>, vector<8x128xf32>
    tpu.vector_store %arg4[%c0_5, %c0_6], %5 {strides = array<i32>} : memref<8x128xf32, #tpu.memory_space<vmem>>, vector<8x128xf32>,
    return
  }
  func.func @transform_0(%arg0: i32) -> (i32, i32) {
    %c0_i32 = arith.constant 0 : i32
    %c0_i32_0 = arith.constant 0 : i32
    return %arg0, %c0_i32 : i32, i32
  }
  func.func @transform_1(%arg0: i32) -> (i32, i32) {
    %c0_i32 = arith.constant 0 : i32
    %c0_i32_0 = arith.constant 0 : i32
    %c0_i32_1 = arith.constant 0 : i32
    return %c0_i32, %c0_i32_0 : i32, i32
  }
  func.func @transform_2(%arg0: i32) -> (i32, i32) {
    %c0_i32 = arith.constant 0 : i32
    %c0_i32_0 = arith.constant 0 : i32
    %c0_i32_1 = arith.constant 0 : i32
    return %c0_i32, %c0_i32_0 : i32, i32
  }
  func.func @transform_3(%arg0: i32) -> (i32, i32) {
    %c0_i32 = arith.constant 0 : i32
    %c0_i32_0 = arith.constant 0 : i32
    return %arg0, %c0_i32 : i32, i32
  }
}

</mosaic_0001>

<bundles_post_ra>
// kernel: tpu_custom_call.1
= control target key start
LH: loop header
LB: loop body
LE: loop exit
PB: predicated region body
PF: predicated region fallthrough
CT: control target
= control target key end

     0   :  { %8 = vsyncpa [#allocation3], 0  ;;  %s881_s0 = inlined_call_operand.hbm [shape: bf16[32,128], index: 0, kind: input, shape index: {}]   ;;  %s882_s1 = inlined_call_operand.hbm [shape: bf16[128,128], index: 1, kind: input, shape index: {}]   ;;  %s883_s2 = inlined_call_operand.vmem [shape: f32[1,128], index: 2, kind: input, shape index: {}]   ;;  %s884_s3 = inlined_call_operand.hbm [shape: f32[32,128], index: 3, kind: output, shape index: {}]  }
   0x1   :  { %10 = vsyncpa [#allocation3 + $0x1], 0 }
   0x2   :  { %11 = vsyncpa [#allocation6], 0 }
   0x3   :  { %12 = vsyncpa [#allocation4], 0 }
   0x4   :  { %14 = vsyncpa [#allocation4 + $0x1], 0  ;;  %s687_s12 = smov 0   ;;  %s689_s13 = smov 0  }
   0x5   :  { %s691_s14 = smov 0   ;;  %s693_s15 = smov 0  }
   0x6 LB: > { %s708_s16 = sadd.s32 4294967295, %s658_s15   ;;  %s409_s17 = sadd.s32 4294967294, %s658_s15   ;;  %s658_s15 = sphi %s693_s15, %s903_s15   ;;  %s654_s14 = sphi %s691_s14, %s902_s14   ;;  %s650_s13 = sphi %s689_s13, %s901_s13   ;;  %s646_s12 = sphi %s687_s12, %s900_s12  }
   0x7   : > { %p40_p0 = scmp.ne.s32.totalorder %s650_s13, %s646_s12  ;;  %p885_p1 = scmp.eq.s32.totalorder %s708_s16, 0 }
   0x8   : > { %p112_p3 = scmp.eq.s32.totalorder %s409_s17, 3  ;;  %p410_p5 = scmp.ge.s32.totalorder %s658_s15, 1 }
   0x9   : > { %p717_p4 = por %p885_p1, %p40_p0  ;;  %p119_p7 = scmp.lt.s32.totalorder %s658_s15, 5 }
   0xa   : > { %p722_p6 = por %p112_p3, %p40_p0  ;;  %s660_s21 = smov [#allocation5]  }
   0xb   : > { %s888_s18 = scalar_select %p717_p4, 1, 0 }
   0xc   : > { %s889_s19 = scalar_select %p722_p6, 1, 0 }
   0xd   : > { %p727_p8 = pnand %p410_p5, %p119_p7  ;;  %s131_s22 = sshll.u32 %s660_s21, 4  ;;  %s132_s22 = int_to_ptr.vmem [resolvable:$true] %s131_s22 }
   0xe   : > { %s740_s24 = sadd.s32 1, %s658_s15   ;;  %s27_s25 = sadd.s32 1, %s654_s14 }
   0xf   : > { %s890_s20 = scalar_select %p727_p8, 1, 0 }
  0x10   : > { %p469_p9 = pneg %p727_p8  ;;  %s24_s26 = ssub.s32 %s658_s15, %s740_s24 }
  0x11   : > { %s530_s29 = scalar_lea.hbm %s882_s1, 1024 }
  0x12   : > { %p735_p10 = pnand %p469_p9, %p885_p1  ;;  %p531_p11 = scmp.ne.s32.totalorder %s882_s1, %s530_s29 }
  0x13   : > { %p537_p3 = scmp.lt.u32.totalorder %s530_s29, %s882_s1 }
  0x14   : > { %p532_p12 = pneg %p735_p10 }
  0x16   : > { %p533_p13 = pnand %p532_p12, %p531_p11 }
  0x18   : > { %p534_p0 = pneg %p533_p13 }
  0x1a   : > { %p539_p5 = pnand %p537_p3, %p534_p0 }
  0x1c   : > { %542 = shalt.err (!%p539_p5)
}
  0x1d   : > { %s543_s7 = scalar_lea.vmem %s132_s22, 1024  ;;  %p551_p2 = scmp.lt.s32.totalorder %s132_s22, %s132_s22 }
  0x1e   : > { %p544_p7 = scmp.ne.s32.totalorder %s132_s22, %s543_s7  ;;  %p552_p6 = scmp.lt.s32.totalorder %s543_s7, %s543_s7 }
  0x20   : > { %p546_p9 = pnand %p544_p7, %p532_p12  ;;  %p553_p4 = por %p552_p6, %p551_p2 }
  0x22   : > { %p547_p1 = pneg %p546_p9 }
  0x24   : > { %p554_p8 = pnand %p553_p4, %p547_p1 }
  0x26   : > { %557 = shalt.err (!%p554_p8)
}
  0x27   : > { %s661_s8 = smov 64   ;;  %s662_s9 = smov 4  }
  0x28   : > { %472 = dma.hbm_to_vmem [thread:$0]  (!%p735_p10), %s882_s1, 1024, %s132_s22, [#allocation6], %s661_s8, %s661_s8, %s662_s9  }
  0x29   : > { %p25_p11 = scmp.eq.s32.totalorder %s24_s26, 0  ;;  %p34_p2 = scmp.ne.s32.totalorder %s654_s14, %s650_s13 }
  0x2a   : > { %p35_p1 = scmp.eq.s32.totalorder %s658_s15, 0  ;;  %p482_p4 = scmp.lt.s32.totalorder %s658_s15, 4 }
  0x2b   : > { %s766_s17 = scalar_select %p25_p11, %s654_s14, %s27_s25  }
  0x2c   : > { %p36_p6 = por %p35_p1, %p34_p2  ;;  %p892_p8 = scmp.eq.s32.totalorder %s708_s16, 3 }
  0x2d   : > { %s148_s27 = sand.u32 1, %s654_s14   ;;  %s414_s28 = sshll.u32 %s658_s15, 6 }
  0x2e   : > { %p770_p12 = por %p892_p8, %p34_p2  ;;  %s413_s29 = sshll.u32 %s148_s27, 2 }
  0x2f   : > { %s779_s4 = scalar_lea.hbm %s881_s0, %s414_s28  ;;  %s152_s22 = scalar_lea.vmem [#allocation2], %s413_s29 }
  0x30   : > { %s159_s25 = sshll.u32 %s152_s22, 4  ;;  %p781_p10 = pnand %p482_p4, %p36_p6  ;;  %s785_s25 = int_to_ptr.vmem [resolvable:$true] %s159_s25 }
  0x31   : > { %s149_s5 = scalar_lea.sflag [#allocation3], %s148_s27  ;;  %s558_s6 = scalar_lea.hbm %s779_s4, 64 }
  0x32   : > { %p559_p13 = scmp.ne.s32.totalorder %s779_s4, %s558_s6  ;;  %p560_p0 = pneg %p781_p10 }
  0x33   : > { %s563_s9 = scalar_lea.hbm %s881_s0, 256  ;;  %p564_p7 = scmp.lt.u32.totalorder %s779_s4, %s881_s0 }
  0x34   : > { %p561_p3 = pnand %p560_p0, %p559_p13  ;;  %p565_p9 = scmp.lt.u32.totalorder %s563_s9, %s558_s6 }
  0x35   : > { %p567_p2 = scmp.lt.u32.totalorder %s558_s6, %s779_s4 }
  0x36   : > { %p562_p5 = pneg %p561_p3  ;;  %p566_p11 = por %p565_p9, %p564_p7 }
  0x38   : > { %p568_p1 = por %p567_p2, %p566_p11 }
  0x3a   : > { %p569_p4 = pnand %p568_p1, %p562_p5 }
  0x3c   : > { %572 = shalt.err (!%p569_p4)
}
  0x3d   : > { %s573_s27 = scalar_lea.vmem %s785_s25, 64  ;;  %s663_s28 = smov [#allocation2]  }
  0x3e   : > { %p574_p6 = scmp.ne.s32.totalorder %s785_s25, %s573_s27  ;;  %s578_s29 = sshll.u32 %s663_s28, 4  ;;  %s579_s29 = int_to_ptr.vmem [resolvable:$false] %s578_s29 }
  0x3f   : > { %s580_s23 = scalar_lea.vmem %s579_s29, 128  ;;  %p581_p3 = scmp.lt.s32.totalorder %s785_s25, %s579_s29 }
  0x40   : > { %p576_p8 = pnand %p574_p6, %p560_p0  ;;  %p582_p7 = scmp.lt.s32.totalorder %s580_s23, %s573_s27 }
  0x42   : > { %p577_p13 = pneg %p576_p8  ;;  %p583_p9 = por %p582_p7, %p581_p3 }
  0x44   : > { %p584_p11 = pnand %p583_p9, %p577_p13 }
  0x46   : > { %587 = shalt.err (!%p584_p11)
}
  0x47   : > { %476 = dma.hbm_to_vmem [thread:$0]  (!%p781_p10), %s779_s4, 64, %s785_s25, %s149_s5  }
  0x48   : > { %p895_p5 = scmp.ne.s32.totalorder %s890_s20, 0 }
  0x49   : > { %s815_s30 = sand.u32 (!%p895_p5), 1, %s650_s13   ;;  %p896_p0 = scmp.ne.s32.totalorder (!%p895_p5), %s888_s18, 0 }
  0x4a   : > { %168 = sbr.rel (%p895_p5) target bundleno = 346 (0x15a), region = 32  ;;  %s416_s22 = sshll.u32 (!%p895_p5), %s815_s30, 2 }
  0x4b   : > { %s171_s6 = scalar_lea.sflag (!%p895_p5), [#allocation3], %s815_s30  ;;  %s819_s7 = scalar_lea.vmem (!%p895_p5), [#allocation2], %s416_s22 }
  0x51   : > { %633 = dma.done.wait (%p896_p0), %s171_s6, 64  }
  0x52   : > { %635 = vsyncadd (%p896_p0), %s171_s6, 4294967232  ;;  %p897_p10 = scmp.eq.s32.totalorder %s708_s16, 0 }
  0x54   : > { %637 = dma.done.wait (%p897_p10), [#allocation6], 1024   ;;  %p898_p2 = pmov %p897_p10 }
  0x55   : > { %v664_v0 = vmov 0.0   ;;  %vm665_vm0 = vmmov 0   ;;  %v522_v1 = vld [vmem:[#allocation5] sm:$0xff]   ;;  %v523_v2 = vld [vmem:[#allocation5 + $0x8] sm:$0xff]   ;;  %v524_v3 = vld [vmem:[#allocation5 + $0x10] sm:$0xff]   ;;  %s418_s18 = sshll.u32 %s815_s30, 3 }
  0x56   : > { %639 = vsyncadd (%p898_p2), [#allocation6], 4294966272  ;;  %441 = vmatprep.subr.bf16.mxu0 %v664_v0  ;;  %457 = vmatprep.mubr.msk.bf16.mxu0 %vm665_vm0, %v664_v0  ;;  %v525_v4 = vld [vmem:[#allocation5 + $0x18] sm:$0xff]   ;;  %v526_v5 = vld [vmem:[#allocation5 + $0x20] sm:$0xff]   ;;  %s429_s25 = sshll.u32 %s708_s16, 7  ;;  %s200_s26 = scalar_lea.vmem [#allocation7], %s418_s18 }
  0x57   : > { %442 = vmatpush3.bf16.msra.mxu0 %v522_v1  ;;  %v527_v6 = vld [vmem:[#allocation5 + $0x28] sm:$0xff]   ;;  %v528_v7 = vld [vmem:[#allocation5 + $0x30] sm:$0xff]   ;;  %v529_v8 = vld [vmem:[#allocation5 + $0x38] sm:$0xff]   ;;  %s329_s5 = sshll.u32 %s200_s26, 4  ;;  %s838_s10 = scalar_lea.hbm %s884_s3, %s429_s25  ;;  %s840_s5 = int_to_ptr.vmem [resolvable:$true] %s329_s5 }
  0x58   : > { %443 = vmatprep.subr.bf16.mxu0 %v664_v0  ;;  %v202_v9 = vld [vmem:[%s819_s7] sm:$0xf]  ;;  %s316_s11 = scalar_lea.sflag [#allocation4], %s815_s30  ;;  %s588_s16 = scalar_lea.vmem %s840_s5, 128 }
  0x59   : > { %v419_v10 = vld [vmem:[%s883_s2] ss:$0 sm:$0xff]  ;;  %p589_p1 = scmp.ne.s32.totalorder %s840_s5, %s588_s16  ;;  %s666_s27 = smov [#allocation7]  }
  0x5a   : > { %s592_s28 = sshll.u32 %s666_s27, 4  ;;  %s593_s28 = int_to_ptr.vmem [resolvable:$false] %s592_s28 }
  0x5b   : > { %444 = vmatpush3.bf16.msra.mxu0 %v523_v2  ;;  %p590_p4 = pnand %p589_p1, %p770_p12  ;;  %s594_s29 = scalar_lea.vmem %s593_s28, 256 }
  0x5c   : > { %445 = vmatprep.subr.bf16.mxu0 %v664_v0  ;;  %p595_p8 = scmp.lt.s32.totalorder %s840_s5, %s593_s28  ;;  %p596_p13 = scmp.lt.s32.totalorder %s594_s29, %s588_s16 }
  0x5d   : > { %p591_p6 = pneg %p590_p4 }
  0x5e   : > { %p597_p3 = por %p596_p13, %p595_p8 }
  0x5f   : > { %446 = vmatpush3.bf16.msra.mxu0 %v524_v3 }
  0x60   : > { %447 = vmatprep.subr.bf16.mxu0 %v664_v0  ;;  %p598_p7 = pnand %p597_p3, %p591_p6 }
  0x63   : > { %448 = vmatpush3.bf16.msra.mxu0 %v525_v4 }
  0x64   : > { %449 = vmatprep.subr.bf16.mxu0 %v664_v0 }
  0x67   : > { %450 = vmatpush3.bf16.msra.mxu0 %v526_v5 }
  0x68   : > { %451 = vmatprep.subr.bf16.mxu0 %v664_v0 }
  0x6b   : > { %452 = vmatpush3.bf16.msra.mxu0 %v527_v6 }
  0x6c   : > { %453 = vmatprep.subr.bf16.mxu0 %v664_v0 }
  0x6f   : > { %454 = vmatpush3.bf16.msra.mxu0 %v528_v7 }
  0x70   : > { %455 = vmatprep.subr.bf16.mxu0 %v664_v0 }
  0x73   : > { %456 = vmatpush3.bf16.msra.mxu0 %v529_v8 }
  0x76   : > { %458 = vmatmul.mubr.bf16.vlgmr.msra.gmra.mrb[0].mxu0 %v202_v9 }
 0x149   : > { %v308_v11 = vpop.f32.mrb[0].mxu0 }
 0x14a   : > { %v309_v12 = vadd.f32 %v419_v10, %v308_v11  ;;  %v459_v13 = vpop.f32.mrb[1].mxu0 }
 0x14b   : > { %v311_v14 = vpop.f32.mrb[2].mxu0 }
 0x14c   : > { %314 = vst [vmem:[%s200_s26] sm:$0xff] %v309_v12  ;;  %v460_v15 = vpop.f32.mrb[3].mxu0 }
 0x14d   : > { %601 = shalt.err (!%p598_p7)
}
 0x14e   : > { %s602_s23 = scalar_lea.hbm %s838_s10, 128  ;;  %s606_s6 = scalar_lea.hbm %s884_s3, 512 }
 0x14f   : > { %p603_p9 = scmp.ne.s32.totalorder %s838_s10, %s602_s23  ;;  %p607_p0 = scmp.lt.u32.totalorder %s838_s10, %s884_s3 }
 0x150   : > { %p608_p10 = scmp.lt.u32.totalorder %s606_s6, %s602_s23  ;;  %p610_p1 = scmp.lt.u32.totalorder %s602_s23, %s838_s10 }
 0x151   : > { %p604_p11 = pnand %p603_p9, %p770_p12 }
 0x152   : > { %p609_p2 = por %p608_p10, %p607_p0 }
 0x153   : > { %p605_p5 = pneg %p604_p11 }
 0x154   : > { %p611_p4 = por %p610_p1, %p609_p2 }
 0x156   : > { %p612_p6 = pnand %p611_p4, %p605_p5 }
 0x158   : > { %615 = shalt.err (!%p612_p6)
}
 0x159   : > { %467 = dma.vmem_to_hbm [thread:$0]  (%p770_p12), %s840_s5, 128, %s838_s10, %s316_s11  }
 0x15a PF: > { %p484_p8 = scmp.ge.s32.totalorder %s658_s15, 2  ;;  %s341_s20 = sand.u32 1, %s646_s12  }
 0x15b   : > { %p899_p13 = scmp.ne.s32.totalorder %s889_s19, 0  ;;  %s342_s4 = scalar_lea.sflag [#allocation4], %s341_s20 }
 0x15d   : > { %p478_p3 = pnand %p484_p8, %p899_p13 }
 0x15f   : > { %641 = dma.done.wait (!%p478_p3), %s342_s4, 128  }
 0x160   : > { %643 = vsyncadd (!%p478_p3), %s342_s4, 4294967168  ;;  %p17_p7 = scmp.ge.s32.totalorder %s740_s24, 6   ;;  %s900_s12 = smov %s650_s13 }
 0x161   : > { %s901_s13 = smov %s654_s14  ;;  %s902_s14 = smov %s766_s17 }
 0x162   : > { %s903_s15 = smov %s740_s24  ;;  %19 = sbr.rel (!%p17_p7) target bundleno = 6 (0x6), region = 81 }
 0x169   :  { %347 = vsyncpa [#allocation3], 1 }
 0x16a   :  { %349 = vsyncpa [#allocation3 + $0x1], 1 }
 0x16b   :  { %350 = vsyncpa [#allocation6], 1 }
 0x16c   :  { %351 = vsyncpa [#allocation4], 1 }
 0x16d   :  { %353 = vsyncpa [#allocation4 + $0x1], 1 }

</bundles_post_ra>
